<compile_context>
chip_gen: v7x
topology: tpu7x:2x2x1
jax: 0.10.0
libtpu: 0.0.40
codegen_flags: <defaults>
</compile_context>

<pallas_src>
import jax
import jax.numpy as jnp
from jax.experimental import pallas as pl
from jax.experimental.pallas import tpu as pltpu


# --------------------------------------------------------------------------------------
# Hardware-aware budgets
# --------------------------------------------------------------------------------------

def _vmem_capacity_bytes() -> int:
    """Physical VMEM capacity; conservative v7x fallback if the query is unavailable."""
    try:
        cap = getattr(pltpu.get_tpu_info(), "vmem_capacity_bytes", None)
        if cap:
            return int(cap)
    except Exception:
        pass
    return 64 << 20  # v7x has the smallest VMEM of the supported generations


_VMEM_CAPACITY = _vmem_capacity_bytes()
# Scoped VMEM limit for the pallas_call: 3/4 of physical capacity (48 MiB on v7x,
# 96 MiB on v5e/v6e), leaving headroom for compiler scratch.
_VMEM_LIMIT_BYTES = (_VMEM_CAPACITY * 3) // 4
# Per-block budget: double-buffered x/out/pos blocks stay well under the limit above
# (8 MiB blocks on v7x, 16 MiB on v5e/v6e).
_BLOCK_BUDGET_BYTES = _VMEM_CAPACITY // 8


def _sublane_multiple(dtype) -> int:
    """Packed-tile height for the second-to-last block dim (8/16/32 for 4/2/1-byte dtypes)."""
    itemsize = jnp.dtype(dtype).itemsize
    if itemsize >= 4:
        return 8
    if itemsize == 2:
        return 16
    return 32


def _pick_tile(total: int, multiple: int, cap: int) -> int:
    """Largest divisor of `total` that is a multiple of `multiple` and <= cap.

    Falls back to `total` itself (a full-dim block is always layout-legal) if none exists.
    """
    best = None
    limit = min(total, cap)
    if total % multiple == 0 and limit >= multiple:
        t = multiple
        while t <= limit:
            if total % t == 0:
                best = t
            t += multiple
    return best if best is not None else total


# --------------------------------------------------------------------------------------
# Kernels
# --------------------------------------------------------------------------------------

def _pos_add_flat_kernel(x_ref, pos_ref, out_ref):
    """Lane-dense flattened add.  x_ref: (TB, TL); pos_ref: (1, TL) broadcast; out: (TB, TL)."""
    out_ref[...] = (x_ref[...] + pos_ref[...]).astype(out_ref.dtype)


def _pos_add_cls_kernel(x_ref, row0_ref, pos_ref, out_ref):
    """Class-token path.

    x_ref:    (TB, N, TD)      patch embeddings for TB batch elements, TD lanes of D
    row0_ref: (1, 1, TD)       precomputed cls_token + pos_embed[:, 0]
    pos_ref:  (1, N, TD)       pos_embed[:, 1:]  (aligned, no sublane-offset read)
    out_ref:  (TB, N + 1, TD)
    """
    tb, _, d = x_ref.shape
    out_ref[:, 0:1, :] = jnp.broadcast_to(row0_ref[...], (tb, 1, d)).astype(out_ref.dtype)
    out_ref[:, 1:, :] = (x_ref[...] + pos_ref[...]).astype(out_ref.dtype)


# --------------------------------------------------------------------------------------
# Wrappers
# --------------------------------------------------------------------------------------

def _positional_embedding_nocls(x, pos_embed):
    """x: (B, N, D); pos_embed: (1, N, D) -> (B, N, D) in the promoted dtype."""
    B, N, D = x.shape
    L = N * D
    out_dtype = jnp.result_type(x.dtype, pos_embed.dtype)
    itemsize = jnp.dtype(out_dtype).itemsize
    sub = max(_sublane_multiple(x.dtype), _sublane_multiple(out_dtype))

    xf = x.reshape(B, L)
    posf = pos_embed.reshape(1, L)

    budget = max(_BLOCK_BUDGET_BYTES, sub * 128 * itemsize)

    # Lane tile first: multiple of 128 (unmasked vst) under the per-block budget.
    tl_cap = max(128, budget // (sub * itemsize))
    TL = _pick_tile(L, 128, tl_cap)

    # Row tile second, capped so TB * TL stays inside the budget even when TL could not be
    # shrunk (L not a multiple of 128 forces TL == L).
    tb_cap = max(1, budget // (TL * itemsize))
    TB = _pick_tile(B, sub, min(256, tb_cap))
    if TB * TL * itemsize > budget:
        # Fall back to the smallest layout-legal row tile (a single packed sublane tile, or
        # the full batch if B is not a multiple of the packing).  Any remaining overrun
        # means no legal smaller block exists; it still sits under the vmem limit for all
        # realistic ViT shapes.
        TB = sub if B % sub == 0 else B

    grid = (B // TB, L // TL)
    out = pl.pallas_call(
        _pos_add_flat_kernel,
        out_shape=jax.ShapeDtypeStruct((B, L), out_dtype),
        grid=grid,
        in_specs=[
            pl.BlockSpec((TB, TL), lambda i, j: (i, j)),
            pl.BlockSpec((1, TL), lambda i, j: (0, j)),
        ],
        out_specs=pl.BlockSpec((TB, TL), lambda i, j: (i, j)),
        compiler_params=pltpu.CompilerParams(
            dimension_semantics=("parallel", "parallel"),
            vmem_limit_bytes=_VMEM_LIMIT_BYTES,
        ),
    )(xf, posf)
    return out.reshape(B, N, D)


def _positional_embedding_cls(x, pos_embed, cls_token):
    """x: (B, N, D); pos_embed: (1, N+1, D); cls_token: (1, 1, D) -> (B, N+1, D)."""
    B, N, D = x.shape
    out_dtype = jnp.result_type(x.dtype, pos_embed.dtype, cls_token.dtype)
    itemsize = jnp.dtype(out_dtype).itemsize

    # One-time, tiny precomputes hoisted out of the kernel (done in the promoted dtype).
    row0 = cls_token + pos_embed[:, :1, :]        # (1, 1, D)
    pos_body = pos_embed[:, 1:, :]                # (1, N, D)

    budget = max(_BLOCK_BUDGET_BYTES, (2 * N + 1) * 128 * itemsize)

    # Lane tile over D: a multiple of 128 dividing D (full D if no such divisor), capped by
    # the per-block budget.  For B == 1 (inference) also split D so the parallel grid has an
    # even number of steps >= 2 and both v7x TensorCores get work.
    td_cap = max(128, budget // max(1, (2 * N + 1) * itemsize))
    td = _pick_tile(D, 128, td_cap)
    if B < 2 and td == D and D % 256 == 0:
        td = _pick_tile(D, 128, D // 2)

    # Batch tile: several batch elements per grid step amortize the fixed per-step overhead;
    # the leading block dim is not constrained by the (8,128) rule.
    per_batch_bytes = (2 * N + 1) * td * itemsize     # one x row-block + one out row-block
    max_tb = max(1, budget // per_batch_bytes)
    tb = 1
    for cand in range(1, B + 1):
        if B % cand == 0 and cand <= max_tb:
            tb = cand
    # Keep >= 2 grid steps along the batch axis when B allows it (megacore sharding and
    # pipeline overlap); even step counts avoid a 2-vs-1 TensorCore imbalance on v7x.
    if B >= 2 and B // tb < 2:
        for cand in range(B // 2, 0, -1):
            if B % cand == 0 and cand <= max_tb:
                tb = cand
                break

    grid = (B // tb, D // td)
    return pl.pallas_call(
        _pos_add_cls_kernel,
        out_shape=jax.ShapeDtypeStruct((B, N + 1, D), out_dtype),
        grid=grid,
        in_specs=[
            pl.BlockSpec((tb, N, td), lambda b, d: (b, 0, d)),
            pl.BlockSpec((1, 1, td), lambda b, d: (0, 0, d)),
            pl.BlockSpec((1, N, td), lambda b, d: (0, 0, d)),
        ],
        out_specs=pl.BlockSpec((tb, N + 1, td), lambda b, d: (b, 0, d)),
        compiler_params=pltpu.CompilerParams(
            dimension_semantics=("parallel", "parallel"),
            vmem_limit_bytes=_VMEM_LIMIT_BYTES,
        ),
    )(x, row0, pos_body)


def positional_embedding(x, pos_embed, cls_token=None):
    """Apply positional embedding (and optional class token) via Pallas TPU kernels.

    Args:
      x:         (B, N, D) patch embeddings
      pos_embed: (1, N+1, D) if cls_token is not None else (1, N, D)
      cls_token: optional (1, 1, D)

    Returns:
      (B, N+1, D) if cls_token is not None else (B, N, D)
    """
    B, N, D = x.shape
    if cls_token is not None:
        assert pos_embed.shape == (1, N + 1, D)
        assert cls_token.shape == (1, 1, D)
        return _positional_embedding_cls(x, pos_embed, cls_token)
    else:
        assert pos_embed.shape == (1, N, D)
        return _positional_embedding_nocls(x, pos_embed)


def _trunc_normal(key, shape, std=0.02, dtype=jnp.float32):
    # Matches nn.init.trunc_normal_(std=0.02): N(0, std) truncated at +/- 2*std.
    return std * jax.random.truncated_normal(key, -2.0, 2.0, shape, dtype)


if __name__ == "__main__":
    # Small shapes consistent with the module: B=2, num_patches=8, embed_dim=32.
    B, N, D = 2, 8, 32
    key = jax.random.PRNGKey(0)
    k_x, k_cls, k_pos, k_pos2 = jax.random.split(key, 4)

    x = jax.random.normal(k_x, (B, N, D), dtype=jnp.float32)
    cls_token = _trunc_normal(k_cls, (1, 1, D))
    pos_embed = _trunc_normal(k_pos, (1, N + 1, D))

    # class_token=True path
    out = positional_embedding(x, pos_embed, cls_token=cls_token)
    out = jax.block_until_ready(out)
    ref = jnp.concatenate([jnp.broadcast_to(cls_token, (B, 1, D)), x], axis=1) + pos_embed
    assert out.shape == (B, N + 1, D)
    assert jnp.allclose(out, ref, atol=1e-6), "cls-path mismatch vs reference"

    # class_token=False path
    pos_nocls = _trunc_normal(k_pos2, (1, N, D))
    out2 = positional_embedding(x, pos_nocls, cls_token=None)
    out2 = jax.block_until_ready(out2)
    ref2 = x + pos_nocls
    assert out2.shape == (B, N, D)
    assert jnp.allclose(out2, ref2, atol=1e-6), "no-cls-path mismatch vs reference"

    # bf16 activations (exercises the dtype-aware sublane tiling / promoted-dtype path).
    x_bf16 = x.astype(jnp.bfloat16)
    pos_bf16 = pos_nocls.astype(jnp.bfloat16)
    out3 = positional_embedding(x_bf16, pos_bf16, cls_token=None)
    out3 = jax.block_until_ready(out3)
    ref3 = x_bf16 + pos_bf16
    assert out3.dtype == jnp.bfloat16 and out3.shape == (B, N, D)
    assert jnp.allclose(out3.astype(jnp.float32), ref3.astype(jnp.float32), atol=1e-2), \
        "bf16 no-cls-path mismatch vs reference"

    print("KERNEL_OK")
</pallas_src>

<mosaic_0001>
module attributes {stable_mosaic.version = 11 : i64} {
  func.func @_pos_add_cls_kernel(%arg0: i32, %arg1: i32, %arg2: memref<1x8x32xf32, #tpu.memory_space<vmem>>, %arg3: memref<1x1x32xf32, #tpu.memory_space<vmem>>, %arg4: memref<1x8x32xf32, #tpu.memory_space<vmem>>, %arg5: memref<1x9x32xf32, #tpu.memory_space<vmem>>) attributes {dimension_semantics = [#tpu.dimension_semantics<parallel>, #tpu.dimension_semantics<parallel>], iteration_bounds = array<i64: 2, 1>, scalar_prefetch = 0 : i64, scratch_operands = 0 : i64, tpu.core_type = #tpu.core_type<tc>, window_params = [{transform_indices = @transform_0, window_bounds = array<i64: 1, 8, 32>}, {transform_indices = @transform_1, window_bounds = array<i64: 1, 1, 32>}, {transform_indices = @transform_2, window_bounds = array<i64: 1, 8, 32>}, {transform_indices = @transform_3, window_bounds = array<i64: 1, 9, 32>}]} {
    %c0 = arith.constant 0 : index
    %c0_0 = arith.constant 0 : index
    %c0_1 = arith.constant 0 : index
    %0 = vector.load %arg3[%c0, %c0_0, %c0_1] : memref<1x1x32xf32, #tpu.memory_space<vmem>>, vector<1x1x32xf32>
    %c0_2 = arith.constant 0 : index
    %c0_3 = arith.constant 0 : index
    %c0_4 = arith.constant 0 : index
    %1 = vector.load %arg5[%c0_2, %c0_3, %c0_4] : memref<1x9x32xf32, #tpu.memory_space<vmem>>, vector<1x1x32xf32>
    tpu.vector_store %arg5[%c0_2, %c0_3, %c0_4], %0 {strides = array<i32>} : memref<1x9x32xf32, #tpu.memory_space<vmem>>, vector<1x1x32xf32>,
    %c0_5 = arith.constant 0 : index
    %c0_6 = arith.constant 0 : index
    %c0_7 = arith.constant 0 : index
    %2 = vector.load %arg2[%c0_5, %c0_6, %c0_7] : memref<1x8x32xf32, #tpu.memory_space<vmem>>, vector<1x8x32xf32>
    %c0_8 = arith.constant 0 : index
    %c0_9 = arith.constant 0 : index
    %c0_10 = arith.constant 0 : index
    %3 = vector.load %arg4[%c0_8, %c0_9, %c0_10] : memref<1x8x32xf32, #tpu.memory_space<vmem>>, vector<1x8x32xf32>
    %4 = arith.addf %2, %3 : vector<1x8x32xf32>
    %c0_11 = arith.constant 0 : index
    %c1 = arith.constant 1 : index
    %c0_12 = arith.constant 0 : index
    %5 = vector.load %arg5[%c0_11, %c1, %c0_12] : memref<1x9x32xf32, #tpu.memory_space<vmem>>, vector<1x8x32xf32>
    tpu.vector_store %arg5[%c0_11, %c1, %c0_12], %4 {strides = array<i32>} : memref<1x9x32xf32, #tpu.memory_space<vmem>>, vector<1x8x32xf32>,
    return
  }
  func.func @transform_0(%arg0: i32, %arg1: i32) -> (i32, i32, i32) {
    %c0_i32 = arith.constant 0 : i32
    %c0_i32_0 = arith.constant 0 : i32
    return %arg0, %c0_i32, %arg1 : i32, i32, i32
  }
  func.func @transform_1(%arg0: i32, %arg1: i32) -> (i32, i32, i32) {
    %c0_i32 = arith.constant 0 : i32
    %c0_i32_0 = arith.constant 0 : i32
    %c0_i32_1 = arith.constant 0 : i32
    return %c0_i32, %c0_i32_0, %arg1 : i32, i32, i32
  }
  func.func @transform_2(%arg0: i32, %arg1: i32) -> (i32, i32, i32) {
    %c0_i32 = arith.constant 0 : i32
    %c0_i32_0 = arith.constant 0 : i32
    %c0_i32_1 = arith.constant 0 : i32
    return %c0_i32, %c0_i32_0, %arg1 : i32, i32, i32
  }
  func.func @transform_3(%arg0: i32, %arg1: i32) -> (i32, i32, i32) {
    %c0_i32 = arith.constant 0 : i32
    %c0_i32_0 = arith.constant 0 : i32
    return %arg0, %c0_i32, %arg1 : i32, i32, i32
  }
}

</mosaic_0001>

<bundles_post_ra>
// kernel: tpu_custom_call.1
= control target key start
LH: loop header
LB: loop body
LE: loop exit
PB: predicated region body
PF: predicated region fallthrough
CT: control target
= control target key end

     0   :  { %8 = vsyncpa [#allocation3], 0  ;;  %s751_s0 = inlined_call_operand.hbm [shape: f32[2,8,32], index: 0, kind: input, shape index: {}]   ;;  %s752_s1 = inlined_call_operand.vmem [shape: f32[1,1,32], index: 1, kind: input, shape index: {}]   ;;  %s753_s2 = inlined_call_operand.hbm [shape: f32[1,8,32], index: 2, kind: input, shape index: {}]   ;;  %s754_s3 = inlined_call_operand.vmem [shape: f32[2,9,32], index: 3, kind: output, shape index: {}]  }
   0x1   :  { %10 = vsyncpa [#allocation3 + $0x1], 0 }
   0x2   :  { %11 = vsyncpa [#allocation5], 0  ;;  %s585_s12 = smov 0   ;;  %s587_s13 = smov 0  }
   0x3   :  { %s589_s14 = smov 0   ;;  %s591_s15 = smov 0  }
   0x4   :  { %s593_s16 = smov 0   ;;  %s595_s17 = smov 0  }
   0x5 LB: > { %s367_s18 = sadd.s32 4294967295, %s561_s17   ;;  %p51_p0 = scmp.ne.s32.totalorder %s545_s13, %s541_s12  ;;  %s561_s17 = sphi %s595_s17, %s17_s17   ;;  %s557_s16 = sphi %s593_s16, %s773_s16   ;;  %s553_s15 = sphi %s591_s15, %s772_s15   ;;  %s549_s14 = sphi %s589_s14, %s771_s14   ;;  %s545_s13 = sphi %s587_s13, %s770_s13   ;;  %s541_s12 = sphi %s585_s12, %s769_s12  }
   0x6   : > { %p615_p1 = scmp.eq.s32.totalorder %s367_s18, 0  ;;  %p369_p2 = scmp.ge.s32.totalorder %s561_s17, 1 }
   0x7   : > { %p142_p3 = scmp.lt.s32.totalorder %s561_s17, 3  ;;  %s563_s22 = smov [#allocation4]  }
   0x8   : > { %s759_s19 = scalar_select %p615_p1, 1, 0 }
   0x9   : > { %p623_p4 = por %p615_p1, %p51_p0  ;;  %p627_p5 = pnand %p369_p2, %p142_p3 }
   0xa   : > { %s163_s23 = sshll.u32 %s563_s22, 4  ;;  %s29_s25 = sadd.s32 1, %s557_s16  ;;  %s164_s23 = int_to_ptr.vmem [resolvable:$true] %s163_s23 }
   0xb   : > { %s760_s20 = scalar_select %p623_p4, 1, 0 }
   0xc   : > { %s761_s21 = scalar_select %p627_p5, 1, 0 }
   0xd   : > { %p389_p6 = pneg %p627_p5  ;;  %s38_s26 = sadd.s32 1, %s549_s14 }
   0xe   : > { %p641_p8 = scmp.ge.s32.totalorder %s29_s25, 2  ;;  %s449_s30 = scalar_lea.hbm %s753_s2, 128 }
   0xf   : > { %p635_p7 = pnand %p389_p6, %p615_p1  ;;  %p450_p9 = scmp.ne.s32.totalorder %s753_s2, %s449_s30 }
  0x10   : > { %s763_s27 = scalar_select %p641_p8, 1, 0 }
  0x11   : > { %p451_p10 = pneg %p635_p7  ;;  %p456_p13 = scmp.lt.u32.totalorder %s449_s30, %s753_s2 }
  0x13   : > { %p452_p11 = pnand %p451_p10, %p450_p9 }
  0x15   : > { %p453_p12 = pneg %p452_p11 }
  0x17   : > { %p458_p0 = pnand %p456_p13, %p453_p12 }
  0x19   : > { %461 = shalt.err (!%p458_p0)
}
  0x1a   : > { %s462_s8 = scalar_lea.vmem %s164_s23, 128  ;;  %p470_p1 = scmp.lt.s32.totalorder %s164_s23, %s164_s23 }
  0x1b   : > { %p463_p2 = scmp.ne.s32.totalorder %s164_s23, %s462_s8  ;;  %p471_p4 = scmp.lt.s32.totalorder %s462_s8, %s462_s8 }
  0x1d   : > { %p465_p3 = pnand %p463_p2, %p451_p10  ;;  %p472_p5 = por %p471_p4, %p470_p1 }
  0x1f   : > { %p466_p6 = pneg %p465_p3 }
  0x21   : > { %p473_p8 = pnand %p472_p5, %p466_p6 }
  0x23   : > { %476 = shalt.err (!%p473_p8)
}
  0x24   : > { %392 = dma.hbm_to_vmem [thread:$0]  (!%p635_p7), %s753_s2, 128, %s164_s23, [#allocation5]  }
  0x25   : > { %p764_p9 = scmp.ne.s32.totalorder %s763_s27, 0  ;;  %p45_p1 = scmp.ne.s32.totalorder %s549_s14, %s545_s13 }
  0x26   : > { %p46_p4 = scmp.eq.s32.totalorder %s561_s17, 0  ;;  %p398_p5 = scmp.lt.s32.totalorder %s561_s17, 2 }
  0x27   : > { %s775_s25 = smov (%p764_p9, %s29_s25), 0  ;;  %s174_s12 = sand.u32 1, %s549_s14  }
  0x28   : > { %s33_s11 = ssub.s32 %s557_s16, %s775_s25  ;;  %p47_p10 = por %p46_p4, %p45_p1 }
  0x29   : > { %p36_p8 = scmp.eq.s32.totalorder %s33_s11, 0  ;;  %s374_s18 = sshll.u32 %s557_s16, 7 }
  0x2a   : > { %s373_s24 = sshll.u32 %s174_s12, 3  ;;  %s681_s23 = scalar_lea.hbm %s751_s0, %s374_s18 }
  0x2b   : > { %s676_s22 = scalar_select %p36_p8, %s549_s14, %s38_s26  }
  0x2c   : > { %s178_s27 = scalar_lea.vmem [#allocation2], %s373_s24  ;;  %p683_p7 = pnand %p398_p5, %p47_p10 }
  0x2d   : > { %s186_s30 = sshll.u32 %s178_s27, 4  ;;  %s175_s26 = scalar_lea.sflag [#allocation3], %s174_s12  ;;  %s687_s30 = int_to_ptr.vmem [resolvable:$true] %s186_s30 }
  0x2e   : > { %s477_s5 = scalar_lea.hbm %s681_s23, 128  ;;  %p479_p12 = pneg %p683_p7 }
  0x2f   : > { %p478_p11 = scmp.ne.s32.totalorder %s681_s23, %s477_s5  ;;  %s482_s8 = scalar_lea.hbm %s751_s0, 256 }
  0x30   : > { %p483_p2 = scmp.lt.u32.totalorder %s681_s23, %s751_s0  ;;  %p484_p3 = scmp.lt.u32.totalorder %s482_s8, %s477_s5 }
  0x31   : > { %p480_p13 = pnand %p479_p12, %p478_p11  ;;  %p486_p9 = scmp.lt.u32.totalorder %s477_s5, %s681_s23 }
  0x32   : > { %p485_p6 = por %p484_p3, %p483_p2 }
  0x33   : > { %p481_p0 = pneg %p480_p13 }
  0x34   : > { %p487_p1 = por %p486_p9, %p485_p6 }
  0x36   : > { %p488_p4 = pnand %p487_p1, %p481_p0 }
  0x38   : > { %491 = shalt.err (!%p488_p4)
}
  0x39   : > { %s492_s11 = scalar_lea.vmem %s687_s30, 128  ;;  %s564_s12 = smov [#allocation2]  }
  0x3a   : > { %p493_p5 = scmp.ne.s32.totalorder %s687_s30, %s492_s11  ;;  %s497_s18 = sshll.u32 %s564_s12, 4  ;;  %s498_s18 = int_to_ptr.vmem [resolvable:$false] %s497_s18 }
  0x3b   : > { %s499_s24 = scalar_lea.vmem %s498_s18, 256  ;;  %p500_p11 = scmp.lt.s32.totalorder %s687_s30, %s498_s18 }
  0x3c   : > { %p495_p8 = pnand %p493_p5, %p479_p12  ;;  %p501_p13 = scmp.lt.s32.totalorder %s499_s24, %s492_s11 }
  0x3e   : > { %p496_p10 = pneg %p495_p8  ;;  %p502_p2 = por %p501_p13, %p500_p11 }
  0x40   : > { %p503_p3 = pnand %p502_p2, %p496_p10 }
  0x42   : > { %506 = shalt.err (!%p503_p3)
}
  0x43   : > { %396 = dma.hbm_to_vmem [thread:$0]  (!%p683_p7), %s681_s23, 128, %s687_s30, %s175_s26  }
  0x44   : > { %p766_p0 = scmp.ne.s32.totalorder %s761_s21, 0 }
  0x45   : > { %s197_s28 = sand.u32 (!%p766_p0), 1, %s545_s13   ;;  %p767_p12 = scmp.ne.s32.totalorder (!%p766_p0), %s760_s20, 0 }
  0x46   : > { %195 = sbr.rel (%p766_p0) target bundleno = 88 (0x58), region = 32  ;;  %s376_s29 = sshll.u32 (!%p766_p0), %s197_s28, 3 }
  0x47   : > { %s198_s27 = scalar_lea.sflag (!%p766_p0), [#allocation3], %s197_s28  ;;  %s201_s5 = scalar_lea.vmem (!%p766_p0), [#allocation2], %s376_s29 }
  0x4d   : > { %532 = dma.done.wait (%p767_p12), %s198_s27, 128  }
  0x4e   : > { %534 = vsyncadd (%p767_p12), %s198_s27, 4294967168  ;;  %p768_p6 = scmp.ne.s32.totalorder %s759_s19, 0 }
  0x50   : > { %536 = dma.done.wait (%p768_p6), [#allocation5], 128  }
  0x51   : > { %538 = vsyncadd (%p768_p6), [#allocation5], 4294967168  ;;  %p237_p7 = scmp.lt.s32.totalorder %s553_s15, 1  ;;  %vm246_vm0 = vcmask 253952   ;;  %v245_v0 = vld [vmem:[%s752_s1] sm:$0x1] }
  0x52   : > { %v248_v1 = vld [vmem:[%s201_s5] sm:$0xff]  ;;  %v249_v2 = vld [vmem:[#allocation4] sm:$0xff]  ;;  %vm251_vm1 = vcmask 261120  }
  0x53   : > { %s777_s15 = smov (!%p237_p7, %s553_s15), 1  ;;  %v250_v3 = vadd.f32 %v249_v2, %v248_v1 }
  0x54   : > { %s382_s21 = sshll.u32 %s777_s15, 4 }
  0x55   : > { %s244_s4 = scalar_lea.vmem %s754_s3, %s382_s21 }
  0x56   : > { %247 = vst.msk [vmem:[%s244_s4] sm:$0x1] %vm246_vm0, %v245_v0 }
  0x57   : > { %252 = vst.msk [vmem:[%s244_s4 + $0x1] sm:$0xff] %vm251_vm1, %v250_v3 }
  0x58 PF: > { %s17_s17 = sadd.s32 1, %s561_s17   ;;  %s769_s12 = smov %s545_s13 }
  0x59   : > { %p14_p9 = scmp.ge.s32.totalorder %s17_s17, 4   ;;  %s770_s13 = smov %s549_s14 }
  0x5a   : > { %s771_s14 = smov %s676_s22  ;;  %s772_s15 = smov %s557_s16 }
  0x5b   : > { %s773_s16 = smov %s775_s25  ;;  %16 = sbr.rel (!%p14_p9) target bundleno = 5 (0x5), region = 80 }
  0x62   :  { %280 = vsyncpa [#allocation3], 1 }
  0x63   :  { %282 = vsyncpa [#allocation3 + $0x1], 1 }
  0x64   :  { %283 = vsyncpa [#allocation5], 1 }

</bundles_post_ra>
